<compile_context>
chip_gen: v5e
topology: v5e:2x2
jax: 0.10.0
libtpu: 0.0.40
codegen_flags: <defaults>
</compile_context>

<pallas_src>
import functools

import jax
import jax.numpy as jnp
from jax.experimental import pallas as pl
from jax.experimental.pallas import tpu as pltpu

_COMPUTE_DTYPE = jnp.bfloat16
_VMEM_LIMIT = 48 * 1024 * 1024


def _compiler_params():
    return pltpu.CompilerParams(
        dimension_semantics=("parallel",),
        vmem_limit_bytes=_VMEM_LIMIT,
    )


# ----------------------------------------------------------------------------
# In-kernel GroupNorm helper (operates on a full-sample (R, C) f32 activation)
# ----------------------------------------------------------------------------
def _group_matrices(C, groups):
    # one-hot "channel belongs to group" matrices built from 2-D iota
    cg = C // groups
    ci = jax.lax.broadcasted_iota(jnp.int32, (C, groups), 0)
    gi = jax.lax.broadcasted_iota(jnp.int32, (C, groups), 1)
    M = (ci // cg == gi).astype(jnp.float32)              # (C, groups)
    gi2 = jax.lax.broadcasted_iota(jnp.int32, (groups, C), 0)
    ci2 = jax.lax.broadcasted_iota(jnp.int32, (groups, C), 1)
    MT = (gi2 == ci2 // cg).astype(jnp.float32)            # (groups, C)
    return M, MT


def _gn_apply(acc, gamma, beta, groups, eps, relu):
    # acc: (R, C) float32 (full spatial extent of one sample); gamma/beta: (1, C) f32
    R, C = acc.shape
    if groups == C:
        # per-channel GroupNorm (gn_proj path): no group-mixing matmuls needed
        mean_c = jnp.mean(acc, axis=0, keepdims=True)
        xc = acc - mean_c
        var_c = jnp.mean(xc * xc, axis=0, keepdims=True)
        inv_c = jax.lax.rsqrt(var_c + eps)
    else:
        cg = C // groups
        n = float(R * cg)
        M, MT = _group_matrices(C, groups)
        # two-pass, numerically robust: group mean first, then variance of centered x
        cs = jnp.sum(acc, axis=0, keepdims=True)                            # (1, C)
        mean_g = jnp.dot(cs, M, preferred_element_type=jnp.float32) / n     # (1, G)
        mean_c = jnp.dot(mean_g, MT, preferred_element_type=jnp.float32)    # (1, C)
        xc = acc - mean_c
        ss = jnp.sum(xc * xc, axis=0, keepdims=True)                        # (1, C)
        var_g = jnp.dot(ss, M, preferred_element_type=jnp.float32) / n      # (1, G)
        inv_g = jax.lax.rsqrt(var_g + eps)
        inv_c = jnp.dot(inv_g, MT, preferred_element_type=jnp.float32)      # (1, C)
    y = xc * inv_c * gamma + beta
    if relu:
        y = jnp.maximum(y, 0.0)
    return y


# ----------------------------------------------------------------------------
# Fused Pallas kernels (one batch element per grid step)
# ----------------------------------------------------------------------------
def _conv1x1_gn_kernel(x_ref, w_ref, g_ref, b_ref, o_ref, *, groups, eps, relu):
    # x: (1, R, Cin) bf16 ; w: (Cin, Cout) bf16 -> o: (1, R, Cout)
    x = x_ref[...]
    _, R, Cin = x.shape
    acc = jnp.dot(x.reshape(R, Cin), w_ref[...],
                  preferred_element_type=jnp.float32)          # (R, Cout) f32
    y = _gn_apply(acc, g_ref[...], b_ref[...], groups, eps, relu)
    o_ref[...] = y.reshape(o_ref.shape).astype(o_ref.dtype)


def _conv1x1_gn_add_relu_kernel(x_ref, r_ref, w_ref, g_ref, b_ref, o_ref,
                                *, groups, eps):
    # x: (1, R, Cin) bf16 ; r: (1, R, Cout) residual ; w: (Cin, Cout) bf16
    x = x_ref[...]
    _, R, Cin = x.shape
    acc = jnp.dot(x.reshape(R, Cin), w_ref[...],
                  preferred_element_type=jnp.float32)
    y = _gn_apply(acc, g_ref[...], b_ref[...], groups, eps, relu=False)
    r = r_ref[...].astype(jnp.float32).reshape(y.shape)
    y = jnp.maximum(r + y, 0.0)
    o_ref[...] = y.reshape(o_ref.shape).astype(o_ref.dtype)


def _conv3x3_gn_relu_kernel(x_ref, w_ref, g_ref, b_ref, o_ref, acc_ref,
                            *, stride, Ho, Wo, Hph, groups, eps):
    # x: (1, s*s*Hph, Wph, Cin) phase-decomposed, halo-padded input of one sample (bf16)
    # w: (9, Cin, Cout) bf16 ; acc_ref: (Ho*Wo, Cout) f32 VMEM scratch accumulator
    s = stride
    x = x_ref[...]
    x = x.reshape(x.shape[1], x.shape[2], x.shape[3])
    w = w_ref[...]
    Cin = x.shape[-1]
    acc_ref[...] = jnp.zeros_like(acc_ref)
    for ky in range(3):
        for kx in range(3):
            p = (ky % s) * s + (kx % s)     # phase = (row parity, col parity)
            oy, ox = ky // s, kx // s       # unit-stride offset within the phase
            patch = x[p * Hph + oy:p * Hph + oy + Ho, ox:ox + Wo, :]
            acc_ref[...] += jnp.dot(patch.reshape(Ho * Wo, Cin), w[ky * 3 + kx],
                                    preferred_element_type=jnp.float32)
    y = _gn_apply(acc_ref[...], g_ref[...], b_ref[...], groups, eps, relu=True)
    o_ref[...] = y.reshape(o_ref.shape).astype(o_ref.dtype)


# ----------------------------------------------------------------------------
# Pallas wrappers
# ----------------------------------------------------------------------------
def conv1x1_gn(x_flat, w, gamma, beta, *, groups, eps, relu, out_dtype):
    # x_flat: (N, R, Cin) bf16 ; w: (Cin, Cout) bf16
    N, R, Cin = x_flat.shape
    Cout = w.shape[1]
    kern = functools.partial(_conv1x1_gn_kernel, groups=groups, eps=eps, relu=relu)
    return pl.pallas_call(
        kern,
        out_shape=jax.ShapeDtypeStruct((N, R, Cout), out_dtype),
        grid=(N,),
        in_specs=[
            pl.BlockSpec((1, R, Cin), lambda n: (n, 0, 0)),
            pl.BlockSpec((Cin, Cout), lambda n: (0, 0)),
            pl.BlockSpec((1, Cout), lambda n: (0, 0)),
            pl.BlockSpec((1, Cout), lambda n: (0, 0)),
        ],
        out_specs=pl.BlockSpec((1, R, Cout), lambda n: (n, 0, 0)),
        compiler_params=_compiler_params(),
    )(x_flat, w, gamma, beta)


def conv1x1_gn_add_relu(x_flat, r_flat, w, gamma, beta, *, groups, eps, out_dtype):
    N, R, Cin = x_flat.shape
    Cout = w.shape[1]
    kern = functools.partial(_conv1x1_gn_add_relu_kernel, groups=groups, eps=eps)
    return pl.pallas_call(
        kern,
        out_shape=jax.ShapeDtypeStruct((N, R, Cout), out_dtype),
        grid=(N,),
        in_specs=[
            pl.BlockSpec((1, R, Cin), lambda n: (n, 0, 0)),
            pl.BlockSpec((1, R, Cout), lambda n: (n, 0, 0)),
            pl.BlockSpec((Cin, Cout), lambda n: (0, 0)),
            pl.BlockSpec((1, Cout), lambda n: (0, 0)),
            pl.BlockSpec((1, Cout), lambda n: (0, 0)),
        ],
        out_specs=pl.BlockSpec((1, R, Cout), lambda n: (n, 0, 0)),
        compiler_params=_compiler_params(),
    )(x_flat, r_flat, w, gamma, beta)


def conv3x3_gn_relu(x, w9, gamma, beta, *, stride, groups, eps, out_dtype):
    # x: (N, H, W, Cin) bf16 ; w9: (9, Cin, Cout) bf16
    N, H, W, Cin = x.shape
    Cout = w9.shape[-1]
    s = stride
    Ho = (H - 1) // s + 1
    Wo = (W - 1) // s + 1
    # pad=1 halo, round padded extents up to a multiple of the stride, then deinterleave
    # rows/cols into s*s phases so every in-kernel tap load is a unit-stride slice.
    Hp2 = -(-(H + 2) // s) * s
    Wp2 = -(-(W + 2) // s) * s
    Hph, Wph = Hp2 // s, Wp2 // s
    # TODO(synk): the pad + phase split is one extra HBM materialization of the conv2
    # input; it could be folded into the kernel DMA (in-kernel halo masking) instead.
    xp = jnp.pad(x, ((0, 0), (1, Hp2 - H - 1), (1, Wp2 - W - 1), (0, 0)))
    xph = xp.reshape(N, Hph, s, Wph, s, Cin)
    xph = jnp.transpose(xph, (0, 2, 4, 1, 3, 5)).reshape(N, s * s * Hph, Wph, Cin)
    kern = functools.partial(_conv3x3_gn_relu_kernel, stride=s, Ho=Ho, Wo=Wo,
                             Hph=Hph, groups=groups, eps=eps)
    return pl.pallas_call(
        kern,
        out_shape=jax.ShapeDtypeStruct((N, Ho * Wo, Cout), out_dtype),
        grid=(N,),
        in_specs=[
            pl.BlockSpec((1, s * s * Hph, Wph, Cin), lambda n: (n, 0, 0, 0)),
            pl.BlockSpec((9, Cin, Cout), lambda n: (0, 0, 0)),
            pl.BlockSpec((1, Cout), lambda n: (0, 0)),
            pl.BlockSpec((1, Cout), lambda n: (0, 0)),
        ],
        out_specs=pl.BlockSpec((1, Ho * Wo, Cout), lambda n: (n, 0, 0)),
        scratch_shapes=[pltpu.VMEM((Ho * Wo, Cout), jnp.float32)],
        compiler_params=_compiler_params(),
    )(xph, w9, gamma, beta)


# ----------------------------------------------------------------------------
# Parameter glue and module forward
# ----------------------------------------------------------------------------
def _std_weight(w):
    # StdConv2d weight standardization (per output filter, biased variance)
    m = jnp.mean(w, axis=(1, 2, 3), keepdims=True)
    v = jnp.var(w, axis=(1, 2, 3), keepdims=True)
    return (w - m) / jnp.sqrt(v + 1e-5)


def init_params(key, cin, cout, cmid, stride):
    ks = jax.random.split(key, 4)
    p = {
        "conv1_w": 0.1 * jax.random.normal(ks[0], (cmid, cin, 1, 1), jnp.float32),
        "conv2_w": 0.1 * jax.random.normal(ks[1], (cmid, cmid, 3, 3), jnp.float32),
        "conv3_w": 0.1 * jax.random.normal(ks[2], (cout, cmid, 1, 1), jnp.float32),
        "gn1_g": jnp.ones((1, cmid), jnp.float32),
        "gn1_b": jnp.zeros((1, cmid), jnp.float32),
        "gn2_g": jnp.ones((1, cmid), jnp.float32),
        "gn2_b": jnp.zeros((1, cmid), jnp.float32),
        "gn3_g": jnp.ones((1, cout), jnp.float32),
        "gn3_b": jnp.zeros((1, cout), jnp.float32),
    }
    if stride != 1 or cin != cout:
        p["down_w"] = 0.1 * jax.random.normal(ks[3], (cout, cin, 1, 1), jnp.float32)
        p["gnp_g"] = jnp.ones((1, cout), jnp.float32)
        p["gnp_b"] = jnp.zeros((1, cout), jnp.float32)
    return p


def preact_bottleneck(x_nchw, params, stride):
    # NCHW in / NCHW out (PyTorch convention); NHWC inside the kernels.
    x = jnp.transpose(x_nchw, (0, 2, 3, 1))
    N, H, W, Cin = x.shape
    cmid = params["conv1_w"].shape[0]
    cout = params["conv3_w"].shape[0]

    # standardized weights, cast to bf16 for the MXU (accumulation stays f32)
    w1 = jnp.transpose(_std_weight(params["conv1_w"])[:, :, 0, 0], (1, 0)).astype(_COMPUTE_DTYPE)
    w2 = jnp.transpose(_std_weight(params["conv2_w"]), (2, 3, 1, 0)).reshape(9, cmid, cmid).astype(_COMPUTE_DTYPE)
    w3 = jnp.transpose(_std_weight(params["conv3_w"])[:, :, 0, 0], (1, 0)).astype(_COMPUTE_DTYPE)

    xb = x.astype(_COMPUTE_DTYPE)
    Ho = (H - 1) // stride + 1
    Wo = (W - 1) // stride + 1

    if "down_w" in params:
        wd = jnp.transpose(_std_weight(params["down_w"])[:, :, 0, 0], (1, 0)).astype(_COMPUTE_DTYPE)
        # TODO(synk): the strided downsample fetch could be folded into the kernel DMA
        # instead of this (small) wrapper-side slice.
        xd = xb[:, ::stride, ::stride, :]
        r_flat = conv1x1_gn(                       # conv1x1(stride) + per-channel GN
            xd.reshape(N, Ho * Wo, Cin), wd, params["gnp_g"], params["gnp_b"],
            groups=cout, eps=1e-5, relu=False, out_dtype=jnp.float32)
    else:
        # stride == 1 and Cin == cout here; keep the skip path in f32
        r_flat = x.reshape(N, H * W, Cin)

    y = conv1x1_gn(                                # conv1 + gn1 + relu
        xb.reshape(N, H * W, Cin), w1, params["gn1_g"], params["gn1_b"],
        groups=32, eps=1e-6, relu=True, out_dtype=_COMPUTE_DTYPE)
    y = y.reshape(N, H, W, cmid)
    y = conv3x3_gn_relu(                           # conv2(stride) + gn2 + relu
        y, w2, params["gn2_g"], params["gn2_b"],
        stride=stride, groups=32, eps=1e-6, out_dtype=_COMPUTE_DTYPE)
    out_flat = conv1x1_gn_add_relu(                # conv3 + gn3 + residual + relu
        y, r_flat, w3, params["gn3_g"], params["gn3_b"],
        groups=32, eps=1e-6, out_dtype=jnp.float32)

    out = out_flat.reshape(N, Ho, Wo, cout)
    return jnp.transpose(out, (0, 3, 1, 2))


# ----------------------------------------------------------------------------
# Pure-JAX reference (f32) for the sanity check
# ----------------------------------------------------------------------------
def _ref_conv(x, w, stride, pad):
    return jax.lax.conv_general_dilated(
        x, w, (stride, stride), pad, dimension_numbers=("NCHW", "OIHW", "NCHW"))


def _ref_gn(x, g, b, groups, eps):
    N, C, H, W = x.shape
    xg = x.reshape(N, groups, C // groups, H, W)
    m = xg.mean(axis=(2, 3, 4), keepdims=True)
    v = xg.var(axis=(2, 3, 4), keepdims=True)
    xn = ((xg - m) / jnp.sqrt(v + eps)).reshape(N, C, H, W)
    return xn * g.reshape(1, C, 1, 1) + b.reshape(1, C, 1, 1)


def ref_forward(x, p, stride):
    if "down_w" in p:
        residual = _ref_conv(x, _std_weight(p["down_w"]), stride, ((0, 0), (0, 0)))
        residual = _ref_gn(residual, p["gnp_g"], p["gnp_b"], residual.shape[1], 1e-5)
    else:
        residual = x
    y = _ref_conv(x, _std_weight(p["conv1_w"]), 1, ((0, 0), (0, 0)))
    y = jax.nn.relu(_ref_gn(y, p["gn1_g"], p["gn1_b"], 32, 1e-6))
    y = _ref_conv(y, _std_weight(p["conv2_w"]), stride, ((1, 1), (1, 1)))
    y = jax.nn.relu(_ref_gn(y, p["gn2_g"], p["gn2_b"], 32, 1e-6))
    y = _ref_conv(y, _std_weight(p["conv3_w"]), 1, ((0, 0), (0, 0)))
    y = _ref_gn(y, p["gn3_g"], p["gn3_b"], 32, 1e-6)
    return jax.nn.relu(residual + y)


# ----------------------------------------------------------------------------
if __name__ == "__main__":
    key = jax.random.PRNGKey(0)
    k1, k2, k3, k4 = jax.random.split(key, 4)

    # Case 1: projection shortcut (stride 2, cin != cout) -- exercises the full block.
    # GroupNorm(32, .) requires channel counts divisible by 32.
    N, CIN, H, W = 2, 64, 16, 16
    COUT, CMID, STRIDE = 128, 32, 2
    x = jax.random.normal(k1, (N, CIN, H, W), jnp.float32)       # NCHW, like PyTorch
    params = init_params(k2, CIN, COUT, CMID, STRIDE)
    out = jax.block_until_ready(preact_bottleneck(x, params, STRIDE))
    assert out.shape == (N, COUT, H // STRIDE, W // STRIDE), out.shape
    ref = jax.block_until_ready(ref_forward(x, params, STRIDE))
    assert jnp.allclose(out, ref, atol=5e-2, rtol=5e-2), (
        float(jnp.max(jnp.abs(out - ref))))

    # Case 2: identity shortcut (stride 1, cin == cout).
    N2, C2, H2, W2, CMID2 = 2, 64, 8, 8, 32
    x2 = jax.random.normal(k3, (N2, C2, H2, W2), jnp.float32)
    params2 = init_params(k4, C2, C2, CMID2, 1)
    out2 = jax.block_until_ready(preact_bottleneck(x2, params2, 1))
    assert out2.shape == (N2, C2, H2, W2), out2.shape
    ref2 = jax.block_until_ready(ref_forward(x2, params2, 1))
    assert jnp.allclose(out2, ref2, atol=5e-2, rtol=5e-2), (
        float(jnp.max(jnp.abs(out2 - ref2))))

    print("KERNEL_OK")
</pallas_src>

<mosaic_0001>
module attributes {stable_mosaic.version = 11 : i64} {
  func.func @_conv1x1_gn_kernel(%arg0: i32, %arg1: memref<1x64x64xbf16, #tpu.memory_space<vmem>>, %arg2: memref<64x128xbf16, #tpu.memory_space<vmem>>, %arg3: memref<1x128xf32, #tpu.memory_space<vmem>>, %arg4: memref<1x128xf32, #tpu.memory_space<vmem>>, %arg5: memref<1x64x128xf32, #tpu.memory_space<vmem>>) attributes {dimension_semantics = [#tpu.dimension_semantics<parallel>], iteration_bounds = array<i64: 2>, scalar_prefetch = 0 : i64, scratch_operands = 0 : i64, tpu.core_type = #tpu.core_type<tc>, window_params = [{transform_indices = @transform_0, window_bounds = array<i64: 1, 64, 64>}, {pipeline_mode = #tpu.pipeline_mode<synchronous>, transform_indices = @transform_1, window_bounds = array<i64: 64, 128>}, {pipeline_mode = #tpu.pipeline_mode<synchronous>, transform_indices = @transform_2, window_bounds = array<i64: 1, 128>}, {pipeline_mode = #tpu.pipeline_mode<synchronous>, transform_indices = @transform_3, window_bounds = array<i64: 1, 128>}, {transform_indices = @transform_4, window_bounds = array<i64: 1, 64, 128>}]} {
    %c0 = arith.constant 0 : index
    %c0_0 = arith.constant 0 : index
    %c0_1 = arith.constant 0 : index
    %0 = vector.load %arg1[%c0, %c0_0, %c0_1] : memref<1x64x64xbf16, #tpu.memory_space<vmem>>, vector<1x64x64xbf16>
    %1 = vector.shape_cast %0 : vector<1x64x64xbf16> to vector<64x64xbf16>
    %c0_2 = arith.constant 0 : index
    %c0_3 = arith.constant 0 : index
    %2 = vector.load %arg2[%c0_2, %c0_3] : memref<64x128xbf16, #tpu.memory_space<vmem>>, vector<64x128xbf16>
    %cst = arith.constant dense<0.000000e+00> : vector<64x128xf32>
    %3 = tpu.matmul %1, %2, %cst {dimension_numbers = #tpu.dot_dimension_numbers<[1], [0], [0], [1], [0, 0, 1, 1], [], []>} : vector<64x64xbf16>, vector<64x128xbf16>, vector<64x128xf32> -> vector<64x128xf32>
    %c0_4 = arith.constant 0 : index
    %c0_5 = arith.constant 0 : index
    %4 = vector.load %arg3[%c0_4, %c0_5] : memref<1x128xf32, #tpu.memory_space<vmem>>, vector<1x128xf32>
    %c0_6 = arith.constant 0 : index
    %c0_7 = arith.constant 0 : index
    %5 = vector.load %arg4[%c0_6, %c0_7] : memref<1x128xf32, #tpu.memory_space<vmem>>, vector<1x128xf32>
    %cst_8 = arith.constant dense<0.000000e+00> : vector<128xf32>
    %6 = vector.multi_reduction <add>, %3, %cst_8 [0] : vector<64x128xf32> to vector<128xf32>
    %7 = vector.shape_cast %6 : vector<128xf32> to vector<1x128xf32>
    %cst_9 = arith.constant 6.400000e+01 : f32
    %8 = vector.broadcast %cst_9 : f32 to vector<1x128xf32>
    %9 = arith.divf %7, %8 : vector<1x128xf32>
    %10 = vector.broadcast %9 : vector<1x128xf32> to vector<64x128xf32>
    %11 = arith.subf %3, %10 : vector<64x128xf32>
    %12 = arith.mulf %11, %11 : vector<64x128xf32>
    %cst_10 = arith.constant dense<0.000000e+00> : vector<128xf32>
    %13 = vector.multi_reduction <add>, %12, %cst_10 [0] : vector<64x128xf32> to vector<128xf32>
    %14 = vector.shape_cast %13 : vector<128xf32> to vector<1x128xf32>
    %cst_11 = arith.constant 6.400000e+01 : f32
    %15 = vector.broadcast %cst_11 : f32 to vector<1x128xf32>
    %16 = arith.divf %14, %15 : vector<1x128xf32>
    %cst_12 = arith.constant 9.99999974E-6 : f32
    %17 = vector.broadcast %cst_12 : f32 to vector<1x128xf32>
    %18 = arith.addf %16, %17 : vector<1x128xf32>
    %19 = math.rsqrt %18 : vector<1x128xf32>
    %20 = vector.broadcast %19 : vector<1x128xf32> to vector<64x128xf32>
    %21 = arith.mulf %11, %20 : vector<64x128xf32>
    %22 = vector.broadcast %4 : vector<1x128xf32> to vector<64x128xf32>
    %23 = arith.mulf %21, %22 : vector<64x128xf32>
    %24 = vector.broadcast %5 : vector<1x128xf32> to vector<64x128xf32>
    %25 = arith.addf %23, %24 : vector<64x128xf32>
    %26 = vector.shape_cast %25 : vector<64x128xf32> to vector<1x64x128xf32>
    %c0_13 = arith.constant 0 : index
    %c0_14 = arith.constant 0 : index
    %c0_15 = arith.constant 0 : index
    %27 = vector.load %arg5[%c0_13, %c0_14, %c0_15] : memref<1x64x128xf32, #tpu.memory_space<vmem>>, vector<1x64x128xf32>
    tpu.vector_store %arg5[%c0_13, %c0_14, %c0_15], %26 {strides = array<i32>} : memref<1x64x128xf32, #tpu.memory_space<vmem>>, vector<1x64x128xf32>,
    return
  }
  func.func @transform_0(%arg0: i32) -> (i32, i32, i32) {
    %c0_i32 = arith.constant 0 : i32
    %c0_i32_0 = arith.constant 0 : i32
    %c0_i32_1 = arith.constant 0 : i32
    return %arg0, %c0_i32, %c0_i32_0 : i32, i32, i32
  }
  func.func @transform_1(%arg0: i32) -> (i32, i32) {
    %c0_i32 = arith.constant 0 : i32
    %c0_i32_0 = arith.constant 0 : i32
    %c0_i32_1 = arith.constant 0 : i32
    return %c0_i32, %c0_i32_0 : i32, i32
  }
  func.func @transform_2(%arg0: i32) -> (i32, i32) {
    %c0_i32 = arith.constant 0 : i32
    %c0_i32_0 = arith.constant 0 : i32
    %c0_i32_1 = arith.constant 0 : i32
    return %c0_i32, %c0_i32_0 : i32, i32
  }
  func.func @transform_3(%arg0: i32) -> (i32, i32) {
    %c0_i32 = arith.constant 0 : i32
    %c0_i32_0 = arith.constant 0 : i32
    %c0_i32_1 = arith.constant 0 : i32
    return %c0_i32, %c0_i32_0 : i32, i32
  }
  func.func @transform_4(%arg0: i32) -> (i32, i32, i32) {
    %c0_i32 = arith.constant 0 : i32
    %c0_i32_0 = arith.constant 0 : i32
    %c0_i32_1 = arith.constant 0 : i32
    return %arg0, %c0_i32, %c0_i32_0 : i32, i32, i32
  }
}

</mosaic_0001>

<bundles_post_ra>
// kernel: tpu_custom_call.1
= control target key start
LH: loop header
LB: loop body
LE: loop exit
PB: predicated region body
PF: predicated region fallthrough
CT: control target
= control target key end

     0   :  { %9 = vsyncpa [#allocation3], 0  ;;  %s995_s0 = inlined_call_operand.hbm [shape: bf16[2,64,64], index: 0, kind: input, shape index: {}]   ;;  %s996_s1 = inlined_call_operand.hbm [shape: bf16[64,128], index: 1, kind: input, shape index: {}]   ;;  %s997_s2 = inlined_call_operand.vmem [shape: f32[1,128], index: 2, kind: input, shape index: {}]   ;;  %s998_s3 = inlined_call_operand.vmem [shape: f32[1,128], index: 3, kind: input, shape index: {}]   ;;  %s999_s4 = inlined_call_operand.hbm [shape: f32[2,64,128], index: 4, kind: output, shape index: {}]  }
   0x1   :  { %11 = vsyncpa [#allocation3 + $0x1], 0 }
   0x2   :  { %12 = vsyncpa [#allocation6], 0 }
   0x3   :  { %13 = vsyncpa [#allocation4], 0 }
   0x4   :  { %15 = vsyncpa [#allocation4 + $0x1], 0  ;;  %s844_s15 = smov 0   ;;  %s846_s16 = smov 0  }
   0x5   :  { %s848_s17 = smov 0   ;;  %s850_s18 = smov 0  }
   0x6 LB: > { %s865_s19 = sadd.s32 4294967295, %s811_s18   ;;  %s539_s20 = sadd.s32 4294967294, %s811_s18   ;;  %s811_s18 = sphi %s850_s18, %s1009_s18   ;;  %s807_s17 = sphi %s848_s17, %s1008_s17   ;;  %s803_s16 = sphi %s846_s16, %s1007_s16   ;;  %s799_s15 = sphi %s844_s15, %s1006_s15  }
   0x7   : > { %p41_p0 = scmp.ne.s32.totalorder %s803_s16, %s799_s15  ;;  %p42_p1 = scmp.eq.s32.totalorder %s865_s19, 0 }
   0x8   : > { %p128_p2 = scmp.eq.s32.totalorder %s865_s19, 1  ;;  %p134_p3 = scmp.eq.s32.totalorder %s539_s20, 1 }
   0x9   : > { %p874_p4 = por %p42_p1, %p41_p0  ;;  %p540_p5 = scmp.ge.s32.totalorder %s811_s18, 1 }
   0xa   : > { %p879_p6 = por %p134_p3, %p41_p0  ;;  %p141_p7 = scmp.lt.s32.totalorder %s811_s18, 3 }
   0xb   : > { %s152_s25 = sshll.u32 %s996_s1, 4  ;;  %s813_s27 = smov [#allocation5]   ;;  %s153_s25 = int_to_ptr.hbm [resolvable:$true] %s152_s25 }
   0xc   : > { %p887_p8 = pnand %p540_p5, %p141_p7  ;;  %s154_s28 = sshll.u32 %s813_s27, 4  ;;  %s155_s28 = int_to_ptr.vmem [resolvable:$true] %s154_s28 }
   0xd   : > { %s897_s29 = sadd.s32 1, %s811_s18   ;;  %s814_s30 = smov 64  }
   0xe   : > { %p621_p9 = pneg %p887_p8  ;;  %s815_s5 = smov 4  }
   0xf   : > { %s25_s6 = ssub.s32 %s811_s18, %s897_s29  ;;  %s28_s7 = sadd.s32 1, %s807_s17 }
  0x10   : > { %p622_p10 = pnand %p621_p9, %p42_p1  ;;  %p26_p12 = scmp.eq.s32.totalorder %s25_s6, 0 }
  0x11   : > { %p35_p13 = scmp.ne.s32.totalorder %s807_s17, %s803_s16  ;;  %p36_p0 = scmp.eq.s32.totalorder %s811_s18, 0 }
  0x12   : > { %624 = dma.hbm_to_vmem [thread:$0]  (!%p622_p10), %s153_s25, 512, %s155_s28, [#allocation6], %s814_s30, %s814_s30, %s815_s5  }
  0x13   : > { %s909_s8 = scalar_select %p26_p12, %s807_s17, %s28_s7  }
  0x14   : > { %p913_p3 = por %p128_p2, %p35_p13  ;;  %p634_p5 = scmp.lt.s32.totalorder %s811_s18, 2 }
  0x15   : > { %s174_s10 = sand.u32 1, %s807_s17   ;;  %s591_s11 = sshll.u32 %s811_s18, 5 }
  0x16   : > { %p37_p7 = por %p36_p0, %p35_p13  ;;  %s543_s12 = sshll.u32 %s174_s10, 5 }
  0x17   : > { %s183_s20 = scalar_lea.hbm %s995_s0, %s591_s11  ;;  %s178_s24 = scalar_lea.vmem [#allocation2], %s543_s12 }
  0x18   : > { %s184_s23 = sshll.u32 %s183_s20, 4  ;;  %s186_s25 = sshll.u32 %s178_s24, 4  ;;  %s185_s23 = int_to_ptr.hbm [resolvable:$true] %s184_s23  ;;  %s187_s25 = int_to_ptr.vmem [resolvable:$true] %s186_s25 }
  0x19   : > { %p923_p9 = pnand %p634_p5, %p37_p7  ;;  %s175_s28 = scalar_lea.sflag [#allocation3], %s174_s10 }
  0x1a   : > { %s711_s6 = sshra.s32 %s185_s23, 4  ;;  %s718_s12 = scalar_lea.hbm %s995_s0, 64  ;;  %s712_s6 = int_to_ptr.hbm [resolvable:$true] %s711_s6 }
  0x1b   : > { %s713_s7 = scalar_lea.hbm %s712_s6, 32  ;;  %p715_p10 = pneg %p923_p9 }
  0x1c   : > { %p714_p2 = scmp.ne.s32.totalorder %s712_s6, %s713_s7  ;;  %p719_p0 = scmp.lt.s32.totalorder %s712_s6, %s995_s0 }
  0x1d   : > { %p720_p5 = scmp.lt.s32.totalorder %s718_s12, %s713_s7 }
  0x1e   : > { %p716_p12 = pnand %p715_p10, %p714_p2 }
  0x1f   : > { %p721_p7 = por %p720_p5, %p719_p0 }
  0x20   : > { %p717_p13 = pneg %p716_p12 }
  0x22   : > { %p722_p11 = pnand %p721_p7, %p717_p13 }
  0x24   : > { %725 = shalt.err (!%p722_p11)
}
  0x25   : > { %628 = dma.hbm_to_vmem [thread:$0]  (!%p923_p9), %s185_s23, 512, %s187_s25, %s175_s28, %s814_s30, %s814_s30, %s815_s5  }
  0x26   : > { %198 = sbr.rel (%p887_p8) target bundleno = 293 (0x125), region = 36  ;;  %s943_s10 = sand.u32 (!%p887_p8), 1, %s803_s16  }
  0x27   : > { %s547_s24 = sshll.u32 (!%p887_p8), %s943_s10, 5  ;;  %s201_s6 = scalar_lea.sflag (!%p887_p8), [#allocation3], %s943_s10 }
  0x28   : > { %s204_s7 = scalar_lea.vmem (!%p887_p8), [#allocation2], %s547_s24 }
  0x2b   : > { %786 = dma.done.wait (%p874_p4), %s201_s6, 512  }
  0x2c   : > { %788 = vsyncadd (%p874_p4), %s201_s6, 4294966784 }
  0x2d   : > { %790 = dma.done.wait (%p42_p1), [#allocation6], 512  }
  0x2e   : > { %792 = vsyncadd (%p42_p1), [#allocation6], 4294966784  ;;  %v599_v0 = vld [vmem:[#allocation5 + $0x18] sm:$0xff]  ;;  %v598_v1 = vld [vmem:[#allocation5 + $0x10] sm:$0xff]  ;;  %vm296_vm0 = vcmask 523264   ;;  %v816_v11 = vmov 64.0  }
  0x2f   : > { %313 = vmatpush.bf16.msra.mxu0 %v599_v0  ;;  %601 = vmatpush.bf16.msra.mxu1 %v599_v0  ;;  %v597_v2 = vld [vmem:[#allocation5 + $0x8] sm:$0xff]  ;;  %v596_v3 = vld [vmem:[#allocation5] sm:$0xff]  ;;  %v594_v6 = vld [vmem:[%s204_s7 + $0x10] sm:$0xff]  ;;  %677 = vrcp.f32 %v816_v11  ;;  %s549_s30 = sshll.u32 %s943_s10, 6  ;;  %s600_s25 = sshll.u32 %s865_s19, 6 }
  0x30   : > { %602 = vmatpush.bf16.msra.mxu2 %v599_v0  ;;  %603 = vmatpush.bf16.msra.mxu3 %v599_v0  ;;  %v592_v4 = vld [vmem:[%s204_s7] sm:$0xff]  ;;  %v593_v5 = vld [vmem:[%s204_s7 + $0x8] sm:$0xff]  ;;  %v595_v7 = vld [vmem:[%s204_s7 + $0x18] sm:$0xff]  ;;  %s452_s11 = scalar_lea.hbm %s999_s4, %s600_s25  ;;  %s234_s13 = scalar_lea.vmem [#allocation7], %s549_s30 }
  0x31   : > { %s453_s19 = sshll.u32 %s234_s13, 4  ;;  %s455_s12 = sshll.u32 %s452_s11, 4  ;;  %s454_s19 = int_to_ptr.vmem [resolvable:$true] %s453_s19  ;;  %s456_s12 = int_to_ptr.hbm [resolvable:$true] %s455_s12 }
  0x32   : > { %s441_s14 = scalar_lea.sflag [#allocation4], %s943_s10  ;;  %s755_s20 = sshra.s32 %s456_s12, 4  ;;  %s756_s20 = int_to_ptr.hbm [resolvable:$true] %s755_s20 }
  0x33   : > { %314 = vmatpush.bf16.msra.mxu0 %v598_v1  ;;  %604 = vmatpush.bf16.msra.mxu1 %v598_v1  ;;  %s757_s24 = scalar_lea.hbm %s756_s20, 64  ;;  %s761_s21 = scalar_lea.hbm %s999_s4, 128 }
  0x34   : > { %605 = vmatpush.bf16.msra.mxu2 %v598_v1  ;;  %606 = vmatpush.bf16.msra.mxu3 %v598_v1  ;;  %p758_p1 = scmp.ne.s32.totalorder %s756_s20, %s757_s24  ;;  %p762_p11 = scmp.lt.s32.totalorder %s756_s20, %s999_s4 }
  0x35   : > { %v678_v17 = vpop.eup %677  ;;  %p763_p9 = scmp.lt.s32.totalorder %s761_s21, %s757_s24 }
  0x36   : > { %v354_v21 = vmul.f32 64.0, %v678_v17  ;;  %vm358_vm1 = vweird.f32 %v678_v17  ;;  %p759_p4 = pnand %p758_p1, %p913_p3 }
  0x37   : > { %315 = vmatpush.bf16.msra.mxu0 %v597_v2  ;;  %607 = vmatpush.bf16.msra.mxu1 %v597_v2  ;;  %p764_p2 = por %p763_p9, %p762_p11 }
  0x38   : > { %608 = vmatpush.bf16.msra.mxu2 %v597_v2  ;;  %609 = vmatpush.bf16.msra.mxu3 %v597_v2  ;;  %v355_v25 = vsub.f32 1.0, %v354_v21  ;;  %p760_p8 = pneg %p759_p4 }
  0x3a   : > { %v356_v28 = vmul.f32 %v678_v17, %v355_v25  ;;  %p765_p10 = pnand %p764_p2, %p760_p8 }
  0x3b   : > { %316 = vmatpush.bf16.msra.mxu0 %v596_v3  ;;  %610 = vmatpush.bf16.msra.mxu1 %v596_v3 }
  0x3c   : > { %611 = vmatpush.bf16.msra.mxu2 %v596_v3  ;;  %612 = vmatpush.bf16.msra.mxu3 %v596_v3  ;;  %v357_v31 = vadd.f32 %v678_v17, %v356_v28 }
  0x3e   : > { %582 = vmatmul.msk.bf16.vlgmr.msra.gmra.mxu0 %vm296_vm0, %v592_v4  ;;  %583 = vmatmul.msk.bf16.vlgmr.msra.gmra.mxu1 %vm296_vm0, %v593_v5  ;;  %v359_v34 = vsel %vm358_vm1, %v678_v17, %v357_v31 }
  0x3f   : > { %584 = vmatmul.msk.bf16.vlgmr.msra.gmra.mxu2 %vm296_vm0, %v594_v6  ;;  %585 = vmatmul.msk.bf16.vlgmr.msra.gmra.mxu3 %vm296_vm0, %v595_v7 }
  0xbb   : > { %v318_v8 = vpop.f32.mrf.mxu0  ;;  %v323_v9 = vpop.f32.mrf.mxu1 }
  0xc2   : > { %v328_v10 = vpop.f32.mrf.mxu2  ;;  %v333_v14 = vpop.f32.mrf.mxu3 }
  0xc3   : > { %v320_v12 = vpop.f32.mrf.mxu0  ;;  %v325_v16 = vpop.f32.mrf.mxu1 }
  0xc4   : > { %v340_v13 = vadd.f32 %v320_v12, %v318_v8 }
  0xc6   : > { %v341_v15 = vadd.f32 %v340_v13, %v323_v9 }
  0xc8   : > { %v342_v18 = vadd.f32 %v341_v15, %v325_v16 }
  0xca   : > { %v343_v19 = vadd.f32 %v342_v18, %v328_v10  ;;  %v330_v20 = vpop.f32.mrf.mxu2  ;;  %v335_v24 = vpop.f32.mrf.mxu3 }
  0xcc   : > { %v344_v22 = vadd.f32 %v343_v19, %v330_v20 }
  0xce   : > { %v345_v23 = vadd.f32 %v344_v22, %v333_v14 }
  0xd0   : > { %v346_v26 = vadd.f32 %v345_v23, %v335_v24 }
  0xd2   : > { %v347_v27 = vrot.slane %v346_v26, 4 }
  0xd4   : > { %v348_v29 = vadd.f32 %v347_v27, %v346_v26 }
  0xd6   : > { %v349_v30 = vrot.slane %v348_v29, 2 }
  0xd8   : > { %v350_v32 = vadd.f32 %v349_v30, %v348_v29 }
  0xda   : > { %v351_v33 = vrot.slane %v350_v32, 1 }
  0xdc   : > { %v352_v35 = vadd.f32 %v351_v33, %v350_v32 }
  0xde   : > { %v360_v36 = vmul.f32 %v359_v34, %v352_v35 }
  0xe0   : > { %v361_v37 = vsub.f32 %v318_v8, %v360_v36  ;;  %v362_v38 = vsub.f32 %v320_v12, %v360_v36  ;;  %v363_v39 = vsub.f32 %v323_v9, %v360_v36  ;;  %v364_v40 = vsub.f32 %v325_v16, %v360_v36  ;;  %v676_v16 = vld [vmem:[%s998_s3] ss:$0 sm:$0xff] }
  0xe1   : > { %v365_v43 = vsub.f32 %v328_v10, %v360_v36  ;;  %v366_v46 = vsub.f32 %v330_v20, %v360_v36  ;;  %v367_v49 = vsub.f32 %v333_v14, %v360_v36  ;;  %v368_v52 = vsub.f32 %v335_v24, %v360_v36  ;;  %v675_v10 = vld [vmem:[%s997_s2] ss:$0 sm:$0xff] }
  0xe2   : > { %v369_v41 = vmul.f32 %v361_v37, %v361_v37  ;;  %v370_v42 = vmul.f32 %v362_v38, %v362_v38  ;;  %v371_v44 = vmul.f32 %v363_v39, %v363_v39  ;;  %v372_v47 = vmul.f32 %v364_v40, %v364_v40 }
  0xe3   : > { %v373_v50 = vmul.f32 %v365_v43, %v365_v43  ;;  %v374_v53 = vmul.f32 %v366_v46, %v366_v46  ;;  %v375_v55 = vmul.f32 %v367_v49, %v367_v49  ;;  %v376_v57 = vmul.f32 %v368_v52, %v368_v52 }
  0xe4   : > { %v377_v45 = vadd.f32 %v370_v42, %v369_v41 }
  0xe6   : > { %v378_v48 = vadd.f32 %v377_v45, %v371_v44 }
  0xe8   : > { %v379_v51 = vadd.f32 %v378_v48, %v372_v47 }
  0xea   : > { %v380_v54 = vadd.f32 %v379_v51, %v373_v50 }
  0xec   : > { %v381_v56 = vadd.f32 %v380_v54, %v374_v53 }
  0xee   : > { %v382_v58 = vadd.f32 %v381_v56, %v375_v55 }
  0xf0   : > { %v383_v59 = vadd.f32 %v382_v58, %v376_v57 }
  0xf2   : > { %v384_v60 = vrot.slane %v383_v59, 4 }
  0xf4   : > { %v385_v61 = vadd.f32 %v384_v60, %v383_v59 }
  0xf6   : > { %v386_v62 = vrot.slane %v385_v61, 2 }
  0xf8   : > { %v387_v63 = vadd.f32 %v386_v62, %v385_v61 }
  0xfa   : > { %v388_v0 = vrot.slane %v387_v63, 1 }
  0xfc   : > { %v389_v1 = vadd.f32 %v388_v0, %v387_v63 }
  0xfe   : > { %v390_v2 = vmul.f32 %v389_v1, %v359_v34 }
 0x100   : > { %v391_v3 = vadd.f32 1e-05, %v390_v2 }
 0x102   : > { %679 = vrsqrt.f32 %v391_v3  ;;  %vm398_vm3 = vweird.f32 %v391_v3 }
 0x108   : > { %v680_v4 = vpop.eup %679 }
 0x109   : > { %v393_v5 = vmul.f32 %v680_v4, %v391_v3  ;;  %vm399_vm2 = vweird.f32 %v680_v4 }
 0x10a   : > { %vm400_vm4 = vmor %vm398_vm3, %vm399_vm2 }
 0x10b   : > { %v394_v6 = vmul.f32 %v680_v4, %v393_v5 }
 0x10d   : > { %v395_v7 = vmul.f32 0.5, %v394_v6 }
 0x10f   : > { %v396_v8 = vsub.f32 1.5, %v395_v7 }
 0x111   : > { %v397_v9 = vmul.f32 %v680_v4, %v396_v8 }
 0x113   : > { %v401_v11 = vsel %vm400_vm4, %v680_v4, %v397_v9 }
 0x114   : > { %v402_v12 = vmul.f32 %v401_v11, %v361_v37  ;;  %v403_v13 = vmul.f32 %v401_v11, %v362_v38  ;;  %v404_v14 = vmul.f32 %v401_v11, %v363_v39  ;;  %v405_v15 = vmul.f32 %v401_v11, %v364_v40 }
 0x115   : > { %v406_v17 = vmul.f32 %v401_v11, %v365_v43  ;;  %v407_v18 = vmul.f32 %v401_v11, %v366_v46  ;;  %v408_v19 = vmul.f32 %v401_v11, %v367_v49  ;;  %v409_v20 = vmul.f32 %v401_v11, %v368_v52 }
 0x116   : > { %v413_v21 = vmul.f32 %v675_v10, %v402_v12  ;;  %v414_v22 = vmul.f32 %v675_v10, %v403_v13  ;;  %v415_v23 = vmul.f32 %v675_v10, %v404_v14  ;;  %v416_v24 = vmul.f32 %v675_v10, %v405_v15 }
 0x117   : > { %v417_v25 = vmul.f32 %v675_v10, %v406_v17  ;;  %v418_v26 = vmul.f32 %v675_v10, %v407_v18  ;;  %v419_v27 = vmul.f32 %v675_v10, %v408_v19  ;;  %v420_v31 = vmul.f32 %v675_v10, %v409_v20 }
 0x118   : > { %v424_v28 = vadd.f32 %v676_v16, %v413_v21  ;;  %v425_v29 = vadd.f32 %v676_v16, %v414_v22  ;;  %v426_v30 = vadd.f32 %v676_v16, %v415_v23  ;;  %v427_v32 = vadd.f32 %v676_v16, %v416_v24 }
 0x119   : > { %v428_v33 = vadd.f32 %v676_v16, %v417_v25  ;;  %v429_v34 = vadd.f32 %v676_v16, %v418_v26  ;;  %v430_v35 = vadd.f32 %v676_v16, %v419_v27  ;;  %v431_v36 = vadd.f32 %v676_v16, %v420_v31 }
 0x11a   : > { %432 = vst [vmem:[%s234_s13] sm:$0xff] %v424_v28 }
 0x11b   : > { %433 = vst [vmem:[%s234_s13 + $0x8] sm:$0xff] %v425_v29 }
 0x11c   : > { %434 = vst [vmem:[%s234_s13 + $0x10] sm:$0xff] %v426_v30 }
 0x11d   : > { %435 = vst [vmem:[%s234_s13 + $0x18] sm:$0xff] %v427_v32 }
 0x11e   : > { %436 = vst [vmem:[%s234_s13 + $0x20] sm:$0xff] %v428_v33 }
 0x11f   : > { %437 = vst [vmem:[%s234_s13 + $0x28] sm:$0xff] %v429_v34 }
 0x120   : > { %438 = vst [vmem:[%s234_s13 + $0x30] sm:$0xff] %v430_v35 }
 0x121   : > { %439 = vst [vmem:[%s234_s13 + $0x38] sm:$0xff] %v431_v36 }
 0x122   : > { %768 = shalt.err (!%p765_p10)
}
 0x123   : > { %s817_s10 = smov 128   ;;  %s818_s5 = smov 8  }
 0x124   : > { %619 = dma.vmem_to_hbm [thread:$0]  (%p913_p3), %s454_s19, 1024, %s456_s12, %s441_s14, %s817_s10, %s817_s10, %s818_s5  }
 0x125 PF: > { %s470_s23 = sand.u32 1, %s799_s15   ;;  %p1005_p12 = scmp.ge.s32.totalorder %s811_s18, 2 }
 0x126   : > { %s471_s25 = scalar_lea.sflag [#allocation4], %s470_s23 }
 0x127   : > { %p630_p13 = pnand %p1005_p12, %p879_p6 }
 0x129   : > { %p631_p0 = pneg %p630_p13 }
 0x12b   : > { %794 = dma.done.wait (%p631_p0), %s471_s25, 1024  }
 0x12c   : > { %796 = vsyncadd (%p631_p0), %s471_s25, 4294966272  ;;  %p18_p5 = scmp.ge.s32.totalorder %s897_s29, 4   ;;  %s1006_s15 = smov %s803_s16 }
 0x12d   : > { %s1007_s16 = smov %s807_s17  ;;  %s1008_s17 = smov %s909_s8 }
 0x12e   : > { %s1009_s18 = smov %s897_s29  ;;  %20 = sbr.rel (!%p18_p5) target bundleno = 6 (0x6), region = 85 }
 0x133   :  { %477 = vsyncpa [#allocation3], 1 }
 0x134   :  { %479 = vsyncpa [#allocation3 + $0x1], 1 }
 0x135   :  { %480 = vsyncpa [#allocation6], 1 }
 0x136   :  { %481 = vsyncpa [#allocation4], 1 }
 0x137   :  { %483 = vsyncpa [#allocation4 + $0x1], 1 }

</bundles_post_ra>
